<compile_context>
chip_gen: v6e
topology: v6e:2x2x1
jax: 0.10.0
libtpu: 0.0.40
codegen_flags: <defaults>
</compile_context>

<pallas_src>
import functools
from math import log

import jax
import jax.numpy as jnp
from jax.experimental import pallas as pl
from jax.experimental.pallas import tpu as pltpu


# ---------------------------------------------------------------------------
# Parameter / buffer setup (plain JAX glue, deterministic, matches torch init)
# ---------------------------------------------------------------------------
def make_positional_encoding(d_model: int, max_len: int = 5000) -> jnp.ndarray:
    """Builds the (max_len, 1, d_model) sinusoidal PE buffer, matching torch."""
    position = jnp.arange(0, max_len, dtype=jnp.float32)[:, None]          # (L, 1)
    div_term = jnp.exp(
        jnp.arange(0, d_model, 2, dtype=jnp.float32) * (-log(10000.0) / d_model)
    )                                                                       # (D/2,)
    pe = jnp.zeros((max_len, d_model), dtype=jnp.float32)
    pe = pe.at[:, 0::2].set(jnp.sin(position * div_term))
    pe = pe.at[:, 1::2].set(jnp.cos(position * div_term))
    return pe[:, None, :]                                                   # (L, 1, D)


# ---------------------------------------------------------------------------
# Pallas kernels
# ---------------------------------------------------------------------------
def _pe_add_kernel(x_ref, pe_ref, o_ref):
    """Eval mode: out = x + pe (dropout is identity at inference).

    x_ref: (TILE_S, B, D), pe_ref: (TILE_S, 1, D) — broadcast over batch.
    """
    y = x_ref[...].astype(jnp.float32) + pe_ref[...]
    o_ref[...] = y.astype(o_ref.dtype)


def _pe_add_dropout_kernel(x_ref, pe_ref, u_ref, o_ref, *, dropout_p):
    """Training mode: out = dropout(x + pe, p) with inverted-dropout scaling.

    u_ref holds uniform [0,1) randoms generated host-side (one per element),
    so the mask is well-defined per element regardless of tiling.
    """
    y = x_ref[...].astype(jnp.float32) + pe_ref[...]
    keep = u_ref[...] >= jnp.float32(dropout_p)          # keep with prob 1 - p
    scale = jnp.float32(1.0 / (1.0 - dropout_p))
    o_ref[...] = jnp.where(keep, y * scale, jnp.float32(0.0)).astype(o_ref.dtype)


# ---------------------------------------------------------------------------
# Wrapper
# ---------------------------------------------------------------------------
def _pick_tile_s(S: int, B: int, D: int) -> int:
    """Pick a sequence tile so one x-block is ~2 MiB (good DMA/compute overlap,
    safely inside the scoped-VMEM budget on v5e/v6e/v7x with double-buffering)."""
    bytes_per_row = max(B * D * 4, 1)          # f32 bytes of one sequence row
    tile_s = max(1, min(S, (2 << 20) // bytes_per_row))
    if tile_s >= 8:                            # sublane-friendly multiple of 8
        tile_s = (tile_s // 8) * 8
    return min(tile_s, S)


def positional_encoding_forward(
    x,
    pe,
    *,
    dropout_p: float = 0.1,
    training: bool = False,
    rng_key=None,
    tile_s: int | None = None,
    donate_x: bool = False,
):
    """x: (S, B, D); pe: (max_len, 1, D) float32.  Returns (S, B, D) in x.dtype."""
    S, B, D = x.shape
    if tile_s is None:
        tile_s = _pick_tile_s(S, B, D)
    grid = (pl.cdiv(S, tile_s),)

    # pe is windowed directly via the BlockSpec index_map on the full buffer —
    # no wrapper-side pe[:S] slice materialized in HBM.
    x_spec = pl.BlockSpec((tile_s, B, D), lambda i: (i, 0, 0))
    pe_spec = pl.BlockSpec((tile_s, 1, D), lambda i: (i, 0, 0))
    out_spec = pl.BlockSpec((tile_s, B, D), lambda i: (i, 0, 0))

    compiler_params = pltpu.CompilerParams(dimension_semantics=("parallel",))
    out_shape = jax.ShapeDtypeStruct((S, B, D), x.dtype)

    # x and out have identical shape/dtype; aliasing gives the HBM buffer back
    # when the caller donates x (kept off by default so x stays readable).
    alias_kwargs = {"input_output_aliases": {0: 0}} if donate_x else {}

    if (not training) or dropout_p <= 0.0:
        return pl.pallas_call(
            _pe_add_kernel,
            out_shape=out_shape,
            grid=grid,
            in_specs=[x_spec, pe_spec],
            out_specs=out_spec,
            compiler_params=compiler_params,
            **alias_kwargs,
        )(x, pe)

    if dropout_p >= 1.0:
        return jnp.zeros((S, B, D), dtype=x.dtype)

    if rng_key is None:
        rng_key = jax.random.PRNGKey(0)
    # TODO(synk): torch's nn.Dropout RNG stream cannot be bit-matched; the mask
    # here comes from jax.random uniforms (math/semantics otherwise identical).
    u = jax.random.uniform(rng_key, (S, B, D), dtype=jnp.float32)

    kernel = functools.partial(_pe_add_dropout_kernel, dropout_p=float(dropout_p))
    return pl.pallas_call(
        kernel,
        out_shape=out_shape,
        grid=grid,
        in_specs=[x_spec, pe_spec, x_spec],   # u has the same tiling as x (f32)
        out_specs=out_spec,
        compiler_params=compiler_params,
        **alias_kwargs,
    )(x, pe, u)


# ---------------------------------------------------------------------------
# Main
# ---------------------------------------------------------------------------
if __name__ == "__main__":
    d_model = 32
    seq_len = 8
    batch = 2
    max_len = 5000
    p = 0.1

    key = jax.random.PRNGKey(0)
    key_x, key_drop = jax.random.split(key)
    x = jax.random.normal(key_x, (seq_len, batch, d_model), dtype=jnp.float32)
    pe = make_positional_encoding(d_model, max_len)

    # ---- Eval mode (dropout == identity), matches torch module in .eval() ----
    out = positional_encoding_forward(x, pe, dropout_p=p, training=False)
    out = jax.block_until_ready(out)

    ref = x + pe[:seq_len, :, :]
    assert out.shape == (seq_len, batch, d_model)
    assert out.dtype == x.dtype
    assert jnp.allclose(out, ref, atol=1e-6), "eval-mode mismatch vs reference"

    # ---- Training mode (fused add + dropout mask + inverted scaling) ----
    out_train = positional_encoding_forward(
        x, pe, dropout_p=p, training=True, rng_key=key_drop
    )
    out_train = jax.block_until_ready(out_train)

    # Plain-JAX reference using the exact same uniforms (deterministic key).
    u_ref = jax.random.uniform(key_drop, (seq_len, batch, d_model), dtype=jnp.float32)
    ref_train = jnp.where(u_ref >= p, ref / (1.0 - p), 0.0)
    assert out_train.shape == out.shape and out_train.dtype == out.dtype
    assert jnp.allclose(out_train, ref_train, atol=1e-5), "train-mode mismatch"

    print("KERNEL_OK")
</pallas_src>

<mosaic_0001>
module attributes {stable_mosaic.version = 11 : i64} {
  func.func @_pe_add_kernel(%arg0: i32, %arg1: memref<8x2x32xf32, #tpu.memory_space<vmem>>, %arg2: memref<8x1x32xf32, #tpu.memory_space<vmem>>, %arg3: memref<8x2x32xf32, #tpu.memory_space<vmem>>) attributes {dimension_semantics = [#tpu.dimension_semantics<parallel>], iteration_bounds = array<i64: 1>, scalar_prefetch = 0 : i64, scratch_operands = 0 : i64, tpu.core_type = #tpu.core_type<tc>, window_params = [{transform_indices = @transform_0, window_bounds = array<i64: 8, 2, 32>}, {transform_indices = @transform_1, window_bounds = array<i64: 8, 1, 32>}, {transform_indices = @transform_2, window_bounds = array<i64: 8, 2, 32>}]} {
    %c0 = arith.constant 0 : index
    %c0_0 = arith.constant 0 : index
    %c0_1 = arith.constant 0 : index
    %0 = vector.load %arg1[%c0, %c0_0, %c0_1] : memref<8x2x32xf32, #tpu.memory_space<vmem>>, vector<8x2x32xf32>
    %c0_2 = arith.constant 0 : index
    %c0_3 = arith.constant 0 : index
    %c0_4 = arith.constant 0 : index
    %1 = vector.load %arg2[%c0_2, %c0_3, %c0_4] : memref<8x1x32xf32, #tpu.memory_space<vmem>>, vector<8x1x32xf32>
    %2 = vector.broadcast %1 : vector<8x1x32xf32> to vector<8x2x32xf32>
    %3 = arith.addf %0, %2 : vector<8x2x32xf32>
    %c0_5 = arith.constant 0 : index
    %c0_6 = arith.constant 0 : index
    %c0_7 = arith.constant 0 : index
    %4 = vector.load %arg3[%c0_5, %c0_6, %c0_7] : memref<8x2x32xf32, #tpu.memory_space<vmem>>, vector<8x2x32xf32>
    tpu.vector_store %arg3[%c0_5, %c0_6, %c0_7], %3 {strides = array<i32>} : memref<8x2x32xf32, #tpu.memory_space<vmem>>, vector<8x2x32xf32>,
    return
  }
  func.func @transform_0(%arg0: i32) -> (i32, i32, i32) {
    %c0_i32 = arith.constant 0 : i32
    %c0_i32_0 = arith.constant 0 : i32
    %c0_i32_1 = arith.constant 0 : i32
    return %arg0, %c0_i32, %c0_i32_0 : i32, i32, i32
  }
  func.func @transform_1(%arg0: i32) -> (i32, i32, i32) {
    %c0_i32 = arith.constant 0 : i32
    %c0_i32_0 = arith.constant 0 : i32
    %c0_i32_1 = arith.constant 0 : i32
    return %arg0, %c0_i32, %c0_i32_0 : i32, i32, i32
  }
  func.func @transform_2(%arg0: i32) -> (i32, i32, i32) {
    %c0_i32 = arith.constant 0 : i32
    %c0_i32_0 = arith.constant 0 : i32
    %c0_i32_1 = arith.constant 0 : i32
    return %arg0, %c0_i32, %c0_i32_0 : i32, i32, i32
  }
}

</mosaic_0001>

<bundles_post_ra>
// kernel: tpu_custom_call.1
= control target key start
LH: loop header
LB: loop body
LE: loop exit
PB: predicated region body
PF: predicated region fallthrough
CT: control target
= control target key end

     0   :  { %vm84_vm0 = vcmask 254976   ;;  %s219_s0 = inlined_call_operand.vmem [shape: f32[8,2,32], index: 0, kind: input, shape index: {}]   ;;  %s220_s1 = inlined_call_operand.vmem [shape: f32[5000,1,32], index: 1, kind: input, shape index: {}]   ;;  %s221_s2 = inlined_call_operand.hbm [shape: f32[8,2,32], index: 2, kind: output, shape index: {}]  }
   0x1   :  { %v12_v0 = vld [vmem:[%s219_s0] sm:$0x3]  ;;  %v13_v3 = vld [vmem:[%s219_s0 + $0x2] sm:$0x3]  ;;  %v14_v5 = vld [vmem:[%s219_s0 + $0x4] sm:$0x3] }
   0x2   :  { %v109_v1 = vld [vmem:[%s220_s1] ss:$0 sm:$0xff]  ;;  %v110_v4 = vld [vmem:[%s220_s1 + $0x1] ss:$0 sm:$0xff]  ;;  %v111_v7 = vld [vmem:[%s220_s1 + $0x2] ss:$0 sm:$0xff] }
   0x3   :  { %v76_v2 = vadd.f32 %v109_v1, %v12_v0  ;;  %v77_v6 = vadd.f32 %v110_v4, %v13_v3  ;;  %v15_v8 = vld [vmem:[%s219_s0 + $0x6] sm:$0x3]  ;;  %v112_v9 = vld [vmem:[%s220_s1 + $0x3] ss:$0 sm:$0xff]  ;;  %v78_v10 = vadd.f32 %v111_v7, %v14_v5  ;;  %v16_v12 = vld [vmem:[%s219_s0 + $0x8] sm:$0x3] }
   0x4   :  { %v79_v11 = vadd.f32 %v112_v9, %v15_v8  ;;  %v113_v13 = vld [vmem:[%s220_s1 + $0x4] ss:$0 sm:$0xff]  ;;  %v17_v14 = vld [vmem:[%s219_s0 + $0xa] sm:$0x3]  ;;  %v114_v16 = vld [vmem:[%s220_s1 + $0x5] ss:$0 sm:$0xff] }
   0x5   :  { %85 = vst.msk [vmem:[#allocation2] sm:$0x3] %vm84_vm0, %v76_v2  ;;  %86 = vst.msk [vmem:[#allocation2 + $0x2] sm:$0x3] %vm84_vm0, %v77_v6  ;;  %v80_v15 = vadd.f32 %v113_v13, %v16_v12  ;;  %v18_v17 = vld [vmem:[%s219_s0 + $0xc] sm:$0x3]  ;;  %v81_v19 = vadd.f32 %v114_v16, %v17_v14 }
   0x6   :  { %v115_v18 = vld [vmem:[%s220_s1 + $0x6] ss:$0 sm:$0xff]  ;;  %87 = vst.msk [vmem:[#allocation2 + $0x4] sm:$0x3] %vm84_vm0, %v78_v10  ;;  %88 = vst.msk [vmem:[#allocation2 + $0x6] sm:$0x3] %vm84_vm0, %v79_v11 }
   0x7   :  { %v82_v20 = vadd.f32 %v115_v18, %v18_v17  ;;  %v19_v21 = vld [vmem:[%s219_s0 + $0xe] sm:$0x3]  ;;  %v116_v22 = vld [vmem:[%s220_s1 + $0x7] ss:$0 sm:$0xff] }
   0x8   :  { %7 = vsyncpa [#allocation3], 0  ;;  %89 = vst.msk [vmem:[#allocation2 + $0x8] sm:$0x3] %vm84_vm0, %v80_v15  ;;  %v83_v23 = vadd.f32 %v116_v22, %v19_v21  ;;  %s142_s13 = smov [#allocation2]  }
   0x9   :  { %s98_s14 = sshll.u32 %s142_s13, 4  ;;  %90 = vst.msk [vmem:[#allocation2 + $0xa] sm:$0x3] %vm84_vm0, %v81_v19  ;;  %91 = vst.msk [vmem:[#allocation2 + $0xc] sm:$0x3] %vm84_vm0, %v82_v20  ;;  %s99_s14 = int_to_ptr.vmem [resolvable:$true] %s98_s14 }
   0xa   :  { %92 = vst.msk [vmem:[#allocation2 + $0xe] sm:$0x3] %vm84_vm0, %v83_v23  ;;  %s120_s15 = scalar_lea.vmem %s99_s14, 256  ;;  %p125_p1 = scmp.lt.s32.totalorder %s99_s14, %s99_s14 }
   0xb   :  { %p121_p0 = scmp.ne.s32.totalorder %s99_s14, %s120_s15  ;;  %p126_p2 = scmp.lt.s32.totalorder %s120_s15, %s120_s15 }
   0xd   :  { %p127_p3 = por %p126_p2, %p125_p1 }
   0xf   :  { %p128_p4 = pnand %p127_p3, %p121_p0 }
  0x11   :  { %131 = shalt.err (!%p128_p4)
}
  0x12   :  { %s143_s0 = smov 32   ;;  %s144_s1 = smov 2  }
  0x13   :  { %104 = dma.vmem_to_hbm [thread:$0]  %s99_s14, 256, %s221_s2, [#allocation3], %s143_s0, %s143_s0, %s144_s1  }
  0x14   :  { %140 = dma.done.wait [#allocation3], 256  }
  0x15   :  { %141 = vsyncadd [#allocation3], 4294967040 }
  0x16   :  { %108 = vsyncpa [#allocation3], 1 }

</bundles_post_ra>
